<compile_context>
chip_gen: v7x
topology: tpu7x:2x2x1
jax: 0.10.0
libtpu: 0.0.40
codegen_flags: <defaults>
</compile_context>

<pallas_src>
import jax
import jax.numpy as jnp
from jax.experimental import pallas as pl
from jax.experimental.pallas import tpu as pltpu


_COMPUTE_DTYPES = (jnp.dtype(jnp.float32), jnp.dtype(jnp.bfloat16))


def _sigmoid_kernel(x_ref, o_ref):
    x = x_ref[...]
    # bf16 stays bf16 (v6e/v7x have bf16 VPU/EUP); everything else -> f32.
    cd = x.dtype if x.dtype in _COMPUTE_DTYPES else jnp.dtype(jnp.float32)
    xf = x.astype(cd)
    half = jnp.asarray(0.5, cd)
    # Exact sigmoid with a single transcendental (tanh -> EUP); the *0.5/+0.5
    # ride the free VALU slots.
    y = half * jnp.tanh(half * xf) + half
    o_ref[...] = y.astype(o_ref.dtype)


def _num_tensorcores() -> int:
    """Best-effort detection of 2-TensorCore chips (v7x); default to 1."""
    try:
        kind = jax.devices()[0].device_kind.lower()
    except Exception:
        return 1
    return 2 if "v7" in kind else 1


def _cdiv(a: int, b: int) -> int:
    return -(-a // b)


def _choose_tiling(rows: int, lane: int, itemsize: int, num_tc: int) -> int:
    """Pick a sublane block size TM.

    - Aligned to the dtype's minimum sublane tile (8 for f32, 16 for bf16,
      32 for int8/fp8) so stores stay unmasked / layouts stay unpacked.
    - Targets ~4 MiB blocks (double-buffered in+out = 16 MiB VMEM).
    - On 2-TC chips, forces an even step count >= 2 for balanced sharding.
    """
    align = max(8, 32 // max(itemsize, 1))
    if rows <= 2 * align:
        # Tiny input: one full-array block (block == array dims is always
        # layout-legal, even when rows is not a multiple of the tile).
        return rows
    target_bytes = 4 * 1024 * 1024
    tm = min(rows, max(align, target_bytes // (lane * itemsize)))
    tm = max(align, (tm // align) * align)
    if num_tc > 1:
        steps = _cdiv(rows, tm)
        if steps < 2 or steps % 2:
            target_steps = 2 if steps < 2 else steps + 1
            tm = max(align, _cdiv(_cdiv(rows, target_steps), align) * align)
    return tm


def _sigmoid_slab(slab: jax.Array) -> jax.Array:
    rows, lane = slab.shape
    itemsize = jnp.dtype(slab.dtype).itemsize
    tm = _choose_tiling(rows, lane, itemsize, _num_tensorcores())
    grid = (pl.cdiv(rows, tm),)  # partial last block (if any) is masked by Pallas
    n = rows * lane
    return pl.pallas_call(
        _sigmoid_kernel,
        out_shape=jax.ShapeDtypeStruct((rows, lane), slab.dtype),
        grid_spec=pltpu.PrefetchScalarGridSpec(
            num_scalar_prefetch=0,
            grid=grid,
            in_specs=[pl.BlockSpec((tm, lane), lambda i: (i, 0))],
            out_specs=pl.BlockSpec((tm, lane), lambda i: (i, 0)),
        ),
        compiler_params=pltpu.CompilerParams(
            dimension_semantics=("parallel",),
            # 4x 4 MiB blocks (in+out, double-buffered) = 16 MiB; 48 MiB limit
            # clears v5e's 16 MiB scoped default and fits v7x's 64 MiB VMEM.
            vmem_limit_bytes=48 * 1024 * 1024,
        ),
        cost_estimate=pl.CostEstimate(
            flops=4 * n, transcendentals=n, bytes_accessed=2 * n * itemsize),
        # TODO(synk): input_output_aliases={0: 0} would drop the output HBM
        # allocation when the caller donates the input; skipped because the
        # input is reused outside the kernel (reference check in __main__).
    )(slab)


def _sigmoid_small(block: jax.Array) -> jax.Array:
    # Single full-array block (no grid): used for tiny inputs / ragged tails.
    return pl.pallas_call(
        _sigmoid_kernel,
        out_shape=jax.ShapeDtypeStruct(block.shape, block.dtype),
    )(block)


def onenet_forward(x: jax.Array) -> jax.Array:
    """Apply sigmoid elementwise via a Pallas TPU kernel (OneNet.forward)."""
    orig_shape = x.shape
    flat = x.reshape(-1)
    n = flat.shape[0]

    # Widest lane width that divides n -> no padding copy (common case).
    lane = None
    for cand in (1024, 512, 256, 128):
        if n % cand == 0:
            lane = cand
            break

    if lane is not None:
        out = _sigmoid_slab(flat.reshape(n // lane, lane))
        return out.reshape(orig_shape)

    # Fallback (n not a multiple of 128): kernel on the 128-lane-divisible
    # prefix, tiny full-block kernel on the tail.  No full-array pad copy.
    head = (n // 128) * 128
    if head == 0:
        return _sigmoid_small(flat.reshape(1, n)).reshape(orig_shape)
    out_head = _sigmoid_slab(flat[:head].reshape(head // 128, 128)).reshape(-1)
    out_tail = _sigmoid_small(flat[head:].reshape(1, n - head)).reshape(-1)
    return jnp.concatenate([out_head, out_tail]).reshape(orig_shape)


if __name__ == "__main__":
    # OneNet has no learnable parameters (ReLU is defined but unused in forward).
    key = jax.random.PRNGKey(0)
    # Small NCHW input consistent with the module's elementwise forward.
    x = jax.random.normal(key, (2, 4, 16, 16), dtype=jnp.float32)

    y = onenet_forward(x)
    y = jax.block_until_ready(y)

    # Exact-form sigmoid: matches jax.nn.sigmoid to float32 rounding error.
    y_ref = jax.nn.sigmoid(x)
    assert y.shape == x.shape and y.dtype == x.dtype
    assert jnp.max(jnp.abs(y - y_ref)) < 1e-5

    print("KERNEL_OK")
</pallas_src>

<mosaic_0001>
module attributes {stable_mosaic.version = 11 : i64} {
  func.func @_sigmoid_kernel(%arg0: i32, %arg1: memref<2x1024xf32, #tpu.memory_space<vmem>>, %arg2: memref<2x1024xf32, #tpu.memory_space<vmem>>) attributes {dimension_semantics = [#tpu.dimension_semantics<parallel>], iteration_bounds = array<i64: 1>, scalar_prefetch = 0 : i64, scratch_operands = 0 : i64, tpu.core_type = #tpu.core_type<tc>, window_params = [{transform_indices = @transform_0, window_bounds = array<i64: 2, 1024>}, {transform_indices = @transform_1, window_bounds = array<i64: 2, 1024>}]} {
    %c0 = arith.constant 0 : index
    %c0_0 = arith.constant 0 : index
    %0 = vector.load %arg1[%c0, %c0_0] : memref<2x1024xf32, #tpu.memory_space<vmem>>, vector<2x1024xf32>
    %cst = arith.constant 5.000000e-01 : f32
    %1 = vector.broadcast %cst : f32 to vector<2x1024xf32>
    %2 = arith.mulf %1, %0 : vector<2x1024xf32>
    %3 = math.tanh %2 : vector<2x1024xf32>
    %cst_1 = arith.constant 5.000000e-01 : f32
    %4 = vector.broadcast %cst_1 : f32 to vector<2x1024xf32>
    %5 = arith.mulf %4, %3 : vector<2x1024xf32>
    %cst_2 = arith.constant 5.000000e-01 : f32
    %6 = vector.broadcast %cst_2 : f32 to vector<2x1024xf32>
    %7 = arith.addf %5, %6 : vector<2x1024xf32>
    %c0_3 = arith.constant 0 : index
    %c0_4 = arith.constant 0 : index
    %8 = vector.load %arg2[%c0_3, %c0_4] : memref<2x1024xf32, #tpu.memory_space<vmem>>, vector<2x1024xf32>
    tpu.vector_store %arg2[%c0_3, %c0_4], %7 {strides = array<i32>} : memref<2x1024xf32, #tpu.memory_space<vmem>>, vector<2x1024xf32>,
    return
  }
  func.func @transform_0(%arg0: i32) -> (i32, i32) {
    %c0_i32 = arith.constant 0 : i32
    %c0_i32_0 = arith.constant 0 : i32
    return %arg0, %c0_i32 : i32, i32
  }
  func.func @transform_1(%arg0: i32) -> (i32, i32) {
    %c0_i32 = arith.constant 0 : i32
    %c0_i32_0 = arith.constant 0 : i32
    return %arg0, %c0_i32 : i32, i32
  }
}

</mosaic_0001>

<bundles_post_ra>
// kernel: tpu_custom_call.1
= control target key start
LH: loop header
LB: loop body
LE: loop exit
PB: predicated region body
PF: predicated region fallthrough
CT: control target
= control target key end

     0   :  { %6 = vsyncpa [#allocation3], 0  ;;  %s138_s0 = inlined_call_operand.hbm [shape: f32[2,1024], index: 0, kind: input, shape index: {}]   ;;  %s139_s1 = inlined_call_operand.hbm [shape: f32[2,1024], index: 1, kind: output, shape index: {}]  }
   0x1   :  { %7 = vsyncpa [#allocation4], 0  ;;  %s102_s6 = smov [#allocation2]   ;;  %s54_s10 = scalar_lea.hbm %s138_s0, 256 }
   0x2   :  { %s14_s7 = sshll.u32 %s102_s6, 4  ;;  %p55_p0 = scmp.ne.s32.totalorder %s138_s0, %s54_s10  ;;  %s15_s7 = int_to_ptr.vmem [resolvable:$true] %s14_s7 }
   0x3   :  { %p58_p1 = scmp.lt.u32.totalorder %s54_s10, %s138_s0 }
   0x5   :  { %p60_p2 = pnand %p58_p1, %p55_p0 }
   0x7   :  { %63 = shalt.err (!%p60_p2)
}
   0x8   :  { %s64_s15 = scalar_lea.vmem %s15_s7, 256  ;;  %p69_p4 = scmp.lt.s32.totalorder %s15_s7, %s15_s7 }
   0x9   :  { %p65_p3 = scmp.ne.s32.totalorder %s15_s7, %s64_s15  ;;  %p70_p5 = scmp.lt.s32.totalorder %s64_s15, %s64_s15 }
   0xb   :  { %p71_p6 = por %p70_p5, %p69_p4 }
   0xd   :  { %p72_p7 = pnand %p71_p6, %p65_p3 }
   0xf   :  { %75 = shalt.err (!%p72_p7)
}
  0x10   :  { %17 = dma.hbm_to_vmem [thread:$0]  %s138_s0, 256, %s15_s7, [#allocation3]  }
  0x11   :  { %98 = dma.done.wait [#allocation3], 256  }
  0x12   :  { %99 = vsyncadd [#allocation3], 4294967040  ;;  %v21_v0 = vld [vmem:[#allocation2] sm:$0xff]  ;;  %v22_v1 = vld [vmem:[#allocation2 + $0x8] sm:$0xff]  ;;  %s103_s18 = smov [#allocation5]  }
  0x13   :  { %v23_v2 = vmul.f32 0.5, %v21_v0  ;;  %v24_v3 = vmul.f32 0.5, %v22_v1  ;;  %s39_s19 = sshll.u32 %s103_s18, 4  ;;  %s40_s19 = int_to_ptr.vmem [resolvable:$true] %s39_s19 }
  0x14   :  { %s76_s0 = scalar_lea.vmem %s40_s19, 256  ;;  %p81_p9 = scmp.lt.s32.totalorder %s40_s19, %s40_s19 }
  0x15   :  { %50 = vtanh.f32 %v23_v2  ;;  %p77_p8 = scmp.ne.s32.totalorder %s40_s19, %s76_s0  ;;  %p82_p10 = scmp.lt.s32.totalorder %s76_s0, %s76_s0 }
  0x16   :  { %52 = vtanh.f32 %v24_v3 }
  0x17   :  { %p83_p11 = por %p82_p10, %p81_p9 }
  0x19   :  { %p84_p12 = pnand %p83_p11, %p77_p8 }
  0x1f   :  { %v51_v4 = vpop.eup %50 }
  0x20   :  { %v53_v5 = vpop.eup %52  ;;  %v27_v6 = vmul.f32 0.5, %v51_v4 }
  0x21   :  { %v28_v7 = vmul.f32 0.5, %v53_v5 }
  0x22   :  { %v29_v8 = vadd.f32 0.5, %v27_v6 }
  0x23   :  { %v30_v9 = vadd.f32 0.5, %v28_v7 }
  0x24   :  { %31 = vst [vmem:[#allocation5] sm:$0xff] %v29_v8 }
  0x25   :  { %32 = vst [vmem:[#allocation5 + $0x8] sm:$0xff] %v30_v9 }
  0x26   :  { %87 = shalt.err (!%p84_p12)
}
  0x27   :  { %s88_s22 = scalar_lea.hbm %s139_s1, 256 }
  0x28   :  { %p89_p13 = scmp.ne.s32.totalorder %s139_s1, %s88_s22  ;;  %p92_p0 = scmp.lt.u32.totalorder %s88_s22, %s139_s1 }
  0x2a   :  { %p94_p1 = pnand %p92_p0, %p89_p13 }
  0x2c   :  { %97 = shalt.err (!%p94_p1)
}
  0x2d   :  { %42 = dma.vmem_to_hbm [thread:$0]  %s40_s19, 256, %s139_s1, [#allocation4]  }
  0x2e   :  { %100 = dma.done.wait [#allocation4], 256  }
  0x2f   :  { %101 = vsyncadd [#allocation4], 4294967040 }
  0x30   :  { %46 = vsyncpa [#allocation3], 1 }
  0x31   :  { %47 = vsyncpa [#allocation4], 1 }

</bundles_post_ra>
